<compile_context>
chip_gen: v7x
topology: tpu7x:2x2x1
jax: 0.10.0
libtpu: 0.0.40
codegen_flags: <defaults>
</compile_context>

<pallas_src>
import functools

import jax
import jax.numpy as jnp
from jax.experimental import pallas as pl
from jax.experimental.pallas import tpu as pltpu

# Logical layer sizes (match the PyTorch module).
D_IN, H1, H2, H3, D_OUT = 784, 256, 128, 64, 10
# Lane-aligned padded sizes.
D_IN_PAD, H3_PAD, D_OUT_PAD = 896, 128, 128
NEG_BIG = -1e30  # bias value for padded logit columns -> exp underflows to 0


def mynet_kernel(x_ref, w1_ref, b1_ref, w2_ref, b2_ref,
                 w3_ref, b3_ref, w4_ref, b4_ref, out_ref):
    # fc1 + relu  (bf16 inputs, f32 accumulation on the MXU)
    h = jnp.dot(x_ref[...], w1_ref[...],
                preferred_element_type=jnp.float32) + b1_ref[...]
    h = jnp.maximum(h, 0.0).astype(jnp.bfloat16)
    # fc2 + relu
    h = jnp.dot(h, w2_ref[...],
                preferred_element_type=jnp.float32) + b2_ref[...]
    h = jnp.maximum(h, 0.0).astype(jnp.bfloat16)
    # fc3 + relu  (output padded to 128 lanes; pad cols are exactly 0)
    h = jnp.dot(h, w3_ref[...],
                preferred_element_type=jnp.float32) + b3_ref[...]
    h = jnp.maximum(h, 0.0).astype(jnp.bfloat16)
    # fc4  (output padded to 128 lanes; padded columns get bias = -1e30 so the
    # max / logsumexp below only "sees" the 10 real classes)
    logits = jnp.dot(h, w4_ref[...],
                     preferred_element_type=jnp.float32) + b4_ref[...]
    # log_softmax over the class axis
    m = jnp.max(logits, axis=-1, keepdims=True)
    shifted = logits - m
    lse = jnp.log(jnp.sum(jnp.exp(shifted), axis=-1, keepdims=True))
    out_ref[...] = (shifted - lse).astype(out_ref.dtype)


def _pad2(a, rows, cols, fill=0.0):
    return jnp.pad(a, ((0, rows - a.shape[0]), (0, cols - a.shape[1])),
                   constant_values=fill)


def init_params(key):
    """Logical (in, out) f32 params mirroring nn.Linear default init."""
    dims = [(D_IN, H1), (H1, H2), (H2, H3), (H3, D_OUT)]
    params = []
    for i, (fan_in, fan_out) in enumerate(dims):
        kw, kb = jax.random.split(jax.random.fold_in(key, i))
        bound = 1.0 / (fan_in ** 0.5)
        w = jax.random.uniform(kw, (fan_in, fan_out), jnp.float32, -bound, bound)
        b = jax.random.uniform(kb, (1, fan_out), jnp.float32, -bound, bound)
        params.extend([w, b])
    return tuple(params)


def pack_params(params, masks=None):
    """Apply optional pruning masks, pad to lane-aligned shapes, cast to bf16.

    masks (if given) are (w-shaped) 0/1 arrays, applied as weight * mask —
    same semantics as MaskedLinear.set_mask / its masked forward.
    """
    w1, b1, w2, b2, w3, b3, w4, b4 = params
    if masks is not None:
        m1, m2, m3, m4 = masks
        w1, w2, w3, w4 = w1 * m1, w2 * m2, w3 * m3, w4 * m4
    w1p = _pad2(w1, D_IN_PAD, H1).astype(jnp.bfloat16)
    w2p = w2.astype(jnp.bfloat16)
    w3p = _pad2(w3, H2, H3_PAD).astype(jnp.bfloat16)
    w4p = _pad2(w4, H3_PAD, D_OUT_PAD).astype(jnp.bfloat16)
    b1p = b1.astype(jnp.float32)
    b2p = b2.astype(jnp.float32)
    b3p = _pad2(b3, 1, H3_PAD, fill=0.0).astype(jnp.float32)
    b4p = _pad2(b4, 1, D_OUT_PAD, fill=NEG_BIG).astype(jnp.float32)
    return (w1p, b1p, w2p, b2p, w3p, b3p, w4p, b4p)


@functools.partial(jax.jit, static_argnames=("tm",))
def mynet_forward(x, packed, tm=None):
    """x: (B, ...) flattened to (B, 784) like x.view(B, -1). Returns (B, 10)."""
    B = x.shape[0]
    x2d = x.reshape(B, -1).astype(jnp.float32)
    assert x2d.shape[1] == D_IN, f"expected {D_IN} features, got {x2d.shape[1]}"

    # Pad K to 896 (lane-aligned) and cast to bf16 for the MXU / smaller DMA.
    xp = jnp.pad(x2d, ((0, 0), (0, D_IN_PAD - D_IN))).astype(jnp.bfloat16)

    # Batch tile: 256 rows feeds the 256x256 MXU on v6e/v7x; small batches use
    # the smallest 8-aligned tile so tiny inputs stay a single grid step.
    if tm is None:
        tm = 256 if B >= 256 else max(8, ((B + 7) // 8) * 8)
    Bp = ((B + tm - 1) // tm) * tm
    if Bp != B:
        xp = jnp.pad(xp, ((0, Bp - B), (0, 0)))
    nb = Bp // tm

    w1, b1, w2, b2, w3, b3, w4, b4 = packed

    flops = 2 * B * (D_IN * H1 + H1 * H2 + H2 * H3 + H3 * D_OUT)
    bytes_accessed = int(
        xp.size * 2
        + sum(int(p.size) * p.dtype.itemsize for p in packed)
        + Bp * D_OUT_PAD * 4)
    cost = pl.CostEstimate(flops=flops,
                           transcendentals=B * D_OUT,
                           bytes_accessed=bytes_accessed)

    grid_spec = pltpu.PrefetchScalarGridSpec(
        num_scalar_prefetch=0,
        grid=(nb,),
        in_specs=[
            pl.BlockSpec((tm, D_IN_PAD), lambda i: (i, 0)),       # x tile
            pl.BlockSpec((D_IN_PAD, H1), lambda i: (0, 0)),       # W1 (resident)
            pl.BlockSpec((1, H1), lambda i: (0, 0)),              # b1
            pl.BlockSpec((H1, H2), lambda i: (0, 0)),             # W2
            pl.BlockSpec((1, H2), lambda i: (0, 0)),              # b2
            pl.BlockSpec((H2, H3_PAD), lambda i: (0, 0)),         # W3
            pl.BlockSpec((1, H3_PAD), lambda i: (0, 0)),          # b3
            pl.BlockSpec((H3_PAD, D_OUT_PAD), lambda i: (0, 0)),  # W4
            pl.BlockSpec((1, D_OUT_PAD), lambda i: (0, 0)),       # b4
        ],
        out_specs=pl.BlockSpec((tm, D_OUT_PAD), lambda i: (i, 0)),
    )

    out_padded = pl.pallas_call(
        mynet_kernel,
        out_shape=jax.ShapeDtypeStruct((Bp, D_OUT_PAD), jnp.float32),
        grid_spec=grid_spec,
        compiler_params=pltpu.CompilerParams(
            dimension_semantics=("parallel",)),
        cost_estimate=cost,
    )(xp, w1, b1, w2, b2, w3, b3, w4, b4)

    return out_padded[:B, :D_OUT]


if __name__ == "__main__":
    key = jax.random.PRNGKey(0)
    kx, kp = jax.random.split(key)

    # Small MNIST-like batch: (B, 1, 28, 28) -> flattened to (B, 784).
    # B=20 with tm=8 exercises a multi-step batch grid plus tail padding.
    B = 20
    x = jax.random.normal(kx, (B, 1, 28, 28), dtype=jnp.float32)
    params = init_params(kp)
    packed = pack_params(params)

    out = mynet_forward(x, packed, tm=8)
    out = jax.block_until_ready(out)
    assert out.shape == (B, 10)

    # Reference 1: mirrors the kernel's bf16-in / f32-accumulate numerics.
    def ref_fwd_bf16(x, params):
        w1, b1, w2, b2, w3, b3, w4, b4 = params

        def lin(h, w, b):
            return jnp.dot(h.astype(jnp.bfloat16), w.astype(jnp.bfloat16),
                           preferred_element_type=jnp.float32) + b

        h = x.reshape(x.shape[0], -1).astype(jnp.float32)
        h = jnp.maximum(lin(h, w1, b1), 0.0)
        h = jnp.maximum(lin(h, w2, b2), 0.0)
        h = jnp.maximum(lin(h, w3, b3), 0.0)
        return jax.nn.log_softmax(lin(h, w4, b4), axis=1)

    # Reference 2: pure f32 semantics of the original PyTorch module.
    def ref_fwd_f32(x, params):
        w1, b1, w2, b2, w3, b3, w4, b4 = params
        h = x.reshape(x.shape[0], -1)
        h = jax.nn.relu(h @ w1 + b1)
        h = jax.nn.relu(h @ w2 + b2)
        h = jax.nn.relu(h @ w3 + b3)
        return jax.nn.log_softmax(h @ w4 + b4, axis=1)

    ref_b = ref_fwd_bf16(x, params)
    ref_f = ref_fwd_f32(x, params)
    assert jnp.allclose(out, ref_b, atol=2e-3, rtol=2e-3), "mismatch vs bf16 reference"
    assert jnp.allclose(out, ref_f, atol=5e-2, rtol=5e-2), "mismatch vs f32 reference"

    print("KERNEL_OK")
</pallas_src>

<mosaic_0001>
module attributes {stable_mosaic.version = 11 : i64} {
  func.func @mynet_kernel(%arg0: i32, %arg1: memref<8x896xbf16, #tpu.memory_space<vmem>>, %arg2: memref<896x256xbf16, #tpu.memory_space<vmem>>, %arg3: memref<1x256xf32, #tpu.memory_space<vmem>>, %arg4: memref<256x128xbf16, #tpu.memory_space<vmem>>, %arg5: memref<1x128xf32, #tpu.memory_space<vmem>>, %arg6: memref<128x128xbf16, #tpu.memory_space<vmem>>, %arg7: memref<1x128xf32, #tpu.memory_space<vmem>>, %arg8: memref<128x128xbf16, #tpu.memory_space<vmem>>, %arg9: memref<1x128xf32, #tpu.memory_space<vmem>>, %arg10: memref<8x128xf32, #tpu.memory_space<vmem>>) attributes {dimension_semantics = [#tpu.dimension_semantics<parallel>], iteration_bounds = array<i64: 3>, scalar_prefetch = 0 : i64, scratch_operands = 0 : i64, tpu.core_type = #tpu.core_type<tc>, window_params = [{transform_indices = @transform_0, window_bounds = array<i64: 8, 896>}, {pipeline_mode = #tpu.pipeline_mode<synchronous>, transform_indices = @transform_1, window_bounds = array<i64: 896, 256>}, {pipeline_mode = #tpu.pipeline_mode<synchronous>, transform_indices = @transform_2, window_bounds = array<i64: 1, 256>}, {pipeline_mode = #tpu.pipeline_mode<synchronous>, transform_indices = @transform_3, window_bounds = array<i64: 256, 128>}, {pipeline_mode = #tpu.pipeline_mode<synchronous>, transform_indices = @transform_4, window_bounds = array<i64: 1, 128>}, {pipeline_mode = #tpu.pipeline_mode<synchronous>, transform_indices = @transform_5, window_bounds = array<i64: 128, 128>}, {pipeline_mode = #tpu.pipeline_mode<synchronous>, transform_indices = @transform_6, window_bounds = array<i64: 1, 128>}, {pipeline_mode = #tpu.pipeline_mode<synchronous>, transform_indices = @transform_7, window_bounds = array<i64: 128, 128>}, {pipeline_mode = #tpu.pipeline_mode<synchronous>, transform_indices = @transform_8, window_bounds = array<i64: 1, 128>}, {transform_indices = @transform_9, window_bounds = array<i64: 8, 128>}]} {
    %c0 = arith.constant 0 : index
    %c0_0 = arith.constant 0 : index
    %0 = vector.load %arg1[%c0, %c0_0] : memref<8x896xbf16, #tpu.memory_space<vmem>>, vector<8x896xbf16>
    %c0_1 = arith.constant 0 : index
    %c0_2 = arith.constant 0 : index
    %1 = vector.load %arg2[%c0_1, %c0_2] : memref<896x256xbf16, #tpu.memory_space<vmem>>, vector<896x256xbf16>
    %cst = arith.constant dense<0.000000e+00> : vector<8x256xf32>
    %2 = tpu.matmul %0, %1, %cst {dimension_numbers = #tpu.dot_dimension_numbers<[1], [0], [0], [1], [0, 0, 1, 1], [], []>} : vector<8x896xbf16>, vector<896x256xbf16>, vector<8x256xf32> -> vector<8x256xf32>
    %c0_3 = arith.constant 0 : index
    %c0_4 = arith.constant 0 : index
    %3 = vector.load %arg3[%c0_3, %c0_4] : memref<1x256xf32, #tpu.memory_space<vmem>>, vector<1x256xf32>
    %4 = vector.broadcast %3 : vector<1x256xf32> to vector<8x256xf32>
    %5 = arith.addf %2, %4 : vector<8x256xf32>
    %cst_5 = arith.constant 0.000000e+00 : f32
    %6 = vector.broadcast %cst_5 : f32 to vector<8x256xf32>
    %7 = arith.maximumf %5, %6 : vector<8x256xf32>
    %8 = arith.truncf %7 : vector<8x256xf32> to vector<8x256xbf16>
    %c0_6 = arith.constant 0 : index
    %c0_7 = arith.constant 0 : index
    %9 = vector.load %arg4[%c0_6, %c0_7] : memref<256x128xbf16, #tpu.memory_space<vmem>>, vector<256x128xbf16>
    %cst_8 = arith.constant dense<0.000000e+00> : vector<8x128xf32>
    %10 = tpu.matmul %8, %9, %cst_8 {dimension_numbers = #tpu.dot_dimension_numbers<[1], [0], [0], [1], [0, 0, 1, 1], [], []>} : vector<8x256xbf16>, vector<256x128xbf16>, vector<8x128xf32> -> vector<8x128xf32>
    %c0_9 = arith.constant 0 : index
    %c0_10 = arith.constant 0 : index
    %11 = vector.load %arg5[%c0_9, %c0_10] : memref<1x128xf32, #tpu.memory_space<vmem>>, vector<1x128xf32>
    %12 = vector.broadcast %11 : vector<1x128xf32> to vector<8x128xf32>
    %13 = arith.addf %10, %12 : vector<8x128xf32>
    %cst_11 = arith.constant 0.000000e+00 : f32
    %14 = vector.broadcast %cst_11 : f32 to vector<8x128xf32>
    %15 = arith.maximumf %13, %14 : vector<8x128xf32>
    %16 = arith.truncf %15 : vector<8x128xf32> to vector<8x128xbf16>
    %c0_12 = arith.constant 0 : index
    %c0_13 = arith.constant 0 : index
    %17 = vector.load %arg6[%c0_12, %c0_13] : memref<128x128xbf16, #tpu.memory_space<vmem>>, vector<128x128xbf16>
    %cst_14 = arith.constant dense<0.000000e+00> : vector<8x128xf32>
    %18 = tpu.matmul %16, %17, %cst_14 {dimension_numbers = #tpu.dot_dimension_numbers<[1], [0], [0], [1], [0, 0, 1, 1], [], []>} : vector<8x128xbf16>, vector<128x128xbf16>, vector<8x128xf32> -> vector<8x128xf32>
    %c0_15 = arith.constant 0 : index
    %c0_16 = arith.constant 0 : index
    %19 = vector.load %arg7[%c0_15, %c0_16] : memref<1x128xf32, #tpu.memory_space<vmem>>, vector<1x128xf32>
    %20 = vector.broadcast %19 : vector<1x128xf32> to vector<8x128xf32>
    %21 = arith.addf %18, %20 : vector<8x128xf32>
    %cst_17 = arith.constant 0.000000e+00 : f32
    %22 = vector.broadcast %cst_17 : f32 to vector<8x128xf32>
    %23 = arith.maximumf %21, %22 : vector<8x128xf32>
    %24 = arith.truncf %23 : vector<8x128xf32> to vector<8x128xbf16>
    %c0_18 = arith.constant 0 : index
    %c0_19 = arith.constant 0 : index
    %25 = vector.load %arg8[%c0_18, %c0_19] : memref<128x128xbf16, #tpu.memory_space<vmem>>, vector<128x128xbf16>
    %cst_20 = arith.constant dense<0.000000e+00> : vector<8x128xf32>
    %26 = tpu.matmul %24, %25, %cst_20 {dimension_numbers = #tpu.dot_dimension_numbers<[1], [0], [0], [1], [0, 0, 1, 1], [], []>} : vector<8x128xbf16>, vector<128x128xbf16>, vector<8x128xf32> -> vector<8x128xf32>
    %c0_21 = arith.constant 0 : index
    %c0_22 = arith.constant 0 : index
    %27 = vector.load %arg9[%c0_21, %c0_22] : memref<1x128xf32, #tpu.memory_space<vmem>>, vector<1x128xf32>
    %28 = vector.broadcast %27 : vector<1x128xf32> to vector<8x128xf32>
    %29 = arith.addf %26, %28 : vector<8x128xf32>
    %cst_23 = arith.constant dense<0xFF800000> : vector<8xf32>
    %30 = vector.multi_reduction <maximumf>, %29, %cst_23 [1] : vector<8x128xf32> to vector<8xf32>
    %31 = vector.shape_cast %30 : vector<8xf32> to vector<8x1xf32>
    %32 = vector.broadcast %31 : vector<8x1xf32> to vector<8x128xf32>
    %33 = arith.subf %29, %32 : vector<8x128xf32>
    %34 = math.exp %33 : vector<8x128xf32>
    %cst_24 = arith.constant dense<0.000000e+00> : vector<8xf32>
    %35 = vector.multi_reduction <add>, %34, %cst_24 [1] : vector<8x128xf32> to vector<8xf32>
    %36 = vector.shape_cast %35 : vector<8xf32> to vector<8x1xf32>
    %37 = math.log %36 : vector<8x1xf32>
    %38 = vector.broadcast %37 : vector<8x1xf32> to vector<8x128xf32>
    %39 = arith.subf %33, %38 : vector<8x128xf32>
    %c0_25 = arith.constant 0 : index
    %c0_26 = arith.constant 0 : index
    %40 = vector.load %arg10[%c0_25, %c0_26] : memref<8x128xf32, #tpu.memory_space<vmem>>, vector<8x128xf32>
    tpu.vector_store %arg10[%c0_25, %c0_26], %39 {strides = array<i32>} : memref<8x128xf32, #tpu.memory_space<vmem>>, vector<8x128xf32>,
    return
  }
  func.func @transform_0(%arg0: i32) -> (i32, i32) {
    %c0_i32 = arith.constant 0 : i32
    %c0_i32_0 = arith.constant 0 : i32
    return %arg0, %c0_i32 : i32, i32
  }
  func.func @transform_1(%arg0: i32) -> (i32, i32) {
    %c0_i32 = arith.constant 0 : i32
    %c0_i32_0 = arith.constant 0 : i32
    %c0_i32_1 = arith.constant 0 : i32
    return %c0_i32, %c0_i32_0 : i32, i32
  }
  func.func @transform_2(%arg0: i32) -> (i32, i32) {
    %c0_i32 = arith.constant 0 : i32
    %c0_i32_0 = arith.constant 0 : i32
    %c0_i32_1 = arith.constant 0 : i32
    return %c0_i32, %c0_i32_0 : i32, i32
  }
  func.func @transform_3(%arg0: i32) -> (i32, i32) {
    %c0_i32 = arith.constant 0 : i32
    %c0_i32_0 = arith.constant 0 : i32
    %c0_i32_1 = arith.constant 0 : i32
    return %c0_i32, %c0_i32_0 : i32, i32
  }
  func.func @transform_4(%arg0: i32) -> (i32, i32) {
    %c0_i32 = arith.constant 0 : i32
    %c0_i32_0 = arith.constant 0 : i32
    %c0_i32_1 = arith.constant 0 : i32
    return %c0_i32, %c0_i32_0 : i32, i32
  }
  func.func @transform_5(%arg0: i32) -> (i32, i32) {
    %c0_i32 = arith.constant 0 : i32
    %c0_i32_0 = arith.constant 0 : i32
    %c0_i32_1 = arith.constant 0 : i32
    return %c0_i32, %c0_i32_0 : i32, i32
  }
  func.func @transform_6(%arg0: i32) -> (i32, i32) {
    %c0_i32 = arith.constant 0 : i32
    %c0_i32_0 = arith.constant 0 : i32
    %c0_i32_1 = arith.constant 0 : i32
    return %c0_i32, %c0_i32_0 : i32, i32
  }
  func.func @transform_7(%arg0: i32) -> (i32, i32) {
    %c0_i32 = arith.constant 0 : i32
    %c0_i32_0 = arith.constant 0 : i32
    %c0_i32_1 = arith.constant 0 : i32
    return %c0_i32, %c0_i32_0 : i32, i32
  }
  func.func @transform_8(%arg0: i32) -> (i32, i32) {
    %c0_i32 = arith.constant 0 : i32
    %c0_i32_0 = arith.constant 0 : i32
    %c0_i32_1 = arith.constant 0 : i32
    return %c0_i32, %c0_i32_0 : i32, i32
  }
  func.func @transform_9(%arg0: i32) -> (i32, i32) {
    %c0_i32 = arith.constant 0 : i32
    %c0_i32_0 = arith.constant 0 : i32
    return %arg0, %c0_i32 : i32, i32
  }
}

</mosaic_0001>

<bundles_post_ra>
// kernel: mynet_forward.1
= control target key start
LH: loop header
LB: loop body
LE: loop exit
PB: predicated region body
PF: predicated region fallthrough
CT: control target
= control target key end

     0   :  { %s2217_s30 = smov 0   ;;  %s2718_s0 = inlined_call_operand.vmem [shape: bf16[24,896], index: 0, kind: input, shape index: {}]   ;;  %s2719_s1 = inlined_call_operand.vmem [shape: bf16[896,256], index: 1, kind: input, shape index: {}]   ;;  %s2720_s2 = inlined_call_operand.vmem [shape: f32[1,256], index: 2, kind: input, shape index: {}]   ;;  %s2721_s3 = inlined_call_operand.vmem [shape: bf16[256,128], index: 3, kind: input, shape index: {}]   ;;  %s2722_s4 = inlined_call_operand.vmem [shape: f32[1,128], index: 4, kind: input, shape index: {}]   ;;  %s2723_s5 = inlined_call_operand.vmem [shape: bf16[128,128], index: 5, kind: input, shape index: {}]   ;;  %s2724_s6 = inlined_call_operand.vmem [shape: f32[1,128], index: 6, kind: input, shape index: {}]   ;;  %s2725_s7 = inlined_call_operand.vmem [shape: bf16[128,128], index: 7, kind: input, shape index: {}]   ;;  %s2726_s8 = inlined_call_operand.vmem [shape: f32[1,128], index: 8, kind: input, shape index: {}]   ;;  %s2727_s9 = inlined_call_operand.vmem [shape: f32[24,128], index: 9, kind: output, shape index: {}]  }
   0x1 LB: > { %s1678_s10 = sadd.s32 4294967295, %s2162_s30   ;;  %p1682_p0 = scmp.ge.s32.totalorder %s2162_s30, 1  ;;  %s2162_s30 = sphi %s2217_s30, %s19_s30  }
   0x2   : > { %p287_p1 = scmp.lt.s32.totalorder %s2162_s30, 4 }
   0x4   : > { %p288_p2 = pnand %p1682_p0, %p287_p1 }
   0x5   : > { %v1945_v0 = vld [vmem:[%s2719_s1 + $0x104] ss:$8 sps:$4 sm:$0xff] (!%p288_p2)   ;;  %v1947_v1 = vld [vmem:[%s2719_s1 + $0x100] ss:$8 sps:$4 sm:$0xff] (!%p288_p2)   ;;  %v1948_v2 = vld [vmem:[%s2719_s1 + $0x114] ss:$8 sps:$4 sm:$0xff] (!%p288_p2)  }
   0x6   : > { %291 = sbr.rel (%p288_p2) target bundleno = 1354 (0x54a), region = 56  ;;  %1086 = vmatprep.subr.bf16.mxu0 (!%p288_p2), %v1945_v0  ;;  %v1950_v3 = vld [vmem:[%s2719_s1 + $0x110] ss:$8 sps:$4 sm:$0xff] (!%p288_p2)   ;;  %v1951_v4 = vld [vmem:[%s2719_s1 + $0x124] ss:$8 sps:$4 sm:$0xff] (!%p288_p2)   ;;  %p322_p3 = scmp.lt.s32.totalorder (!%p288_p2), %s1678_s10, 2 }
   0x7   : > { %1087 = vmatpush1.bf16.msra.mxu0 (!%p288_p2), %v1947_v1  ;;  %v1953_v5 = vld [vmem:[%s2719_s1 + $0x120] ss:$8 sps:$4 sm:$0xff] (!%p288_p2)   ;;  %v1954_v6 = vld [vmem:[%s2719_s1 + $0x134] ss:$8 sps:$4 sm:$0xff] (!%p288_p2)   ;;  %v1956_v7 = vld [vmem:[%s2719_s1 + $0x130] ss:$8 sps:$4 sm:$0xff] (!%p288_p2)  }
   0x8   : > { %1088 = vmatprep.subr.bf16.mxu0 (!%p288_p2), %v1948_v2  ;;  %v1957_v8 = vld [vmem:[%s2719_s1 + $0x144] ss:$8 sps:$4 sm:$0xff] (!%p288_p2)   ;;  %v1959_v9 = vld [vmem:[%s2719_s1 + $0x140] ss:$8 sps:$4 sm:$0xff] (!%p288_p2)   ;;  %v1960_v10 = vld [vmem:[%s2719_s1 + $0x154] ss:$8 sps:$4 sm:$0xff] (!%p288_p2)  }
   0x9   : > { %v1962_v11 = vld [vmem:[%s2719_s1 + $0x150] ss:$8 sps:$4 sm:$0xff] (!%p288_p2)   ;;  %v1963_v12 = vld [vmem:[%s2719_s1 + $0x164] ss:$8 sps:$4 sm:$0xff] (!%p288_p2)   ;;  %v1965_v15 = vld [vmem:[%s2719_s1 + $0x160] ss:$8 sps:$4 sm:$0xff] (!%p288_p2)  }
   0xa   : > { %v1966_v16 = vld [vmem:[%s2719_s1 + $0x174] ss:$8 sps:$4 sm:$0xff] (!%p288_p2)   ;;  %v1968_v17 = vld [vmem:[%s2719_s1 + $0x170] ss:$8 sps:$4 sm:$0xff] (!%p288_p2)   ;;  %v1969_v18 = vld [vmem:[%s2719_s1 + $0x184] ss:$8 sps:$4 sm:$0xff] (!%p288_p2)  }
   0xb   : > { %1089 = vmatpush1.bf16.msra.mxu0 (!%p288_p2), %v1950_v3  ;;  %v1971_v19 = vld [vmem:[%s2719_s1 + $0x180] ss:$8 sps:$4 sm:$0xff] (!%p288_p2)   ;;  %v1972_v20 = vld [vmem:[%s2719_s1 + $0x194] ss:$8 sps:$4 sm:$0xff] (!%p288_p2)   ;;  %v2016_v21 = vld [vmem:[%s2719_s1 + $0x4] ss:$8 sps:$4 sm:$0xff] (!%p288_p2)  }
   0xc   : > { %1090 = vmatprep.subr.bf16.mxu0 (!%p288_p2), %v1951_v4  ;;  %v2018_v22 = vld [vmem:[%s2719_s1] ss:$8 sps:$4 sm:$0xff] (!%p288_p2)   ;;  %1045 = vmatprep.subr.bf16.mxu1 (!%p288_p2), %v2016_v21  ;;  %v2022_v23 = vld [vmem:[%s2719_s1 + $0x14] ss:$8 sps:$4 sm:$0xff] (!%p288_p2)   ;;  %v2024_v24 = vld [vmem:[%s2719_s1 + $0x10] ss:$8 sps:$4 sm:$0xff] (!%p288_p2)  }
   0xd   : > { %s2729_s10 = smov (!%p322_p3, %s1678_s10), 2  ;;  %1046 = vmatpush1.bf16.msra.mxu1 %v2018_v22  ;;  %v1974_v25 = vld [vmem:[%s2719_s1 + $0x190] ss:$8 sps:$4 sm:$0xff]   ;;  %v1975_v26 = vld [vmem:[%s2719_s1 + $0x1a4] ss:$8 sps:$4 sm:$0xff]   ;;  %vm2166_vm0 = vmmov 0  }
   0xe   : > { %s1933_s29 = smul.u32 28, %s2729_s10  ;;  %1047 = vmatprep.subr.bf16.mxu1 %v2022_v23  ;;  %v2028_v27 = vld [vmem:[%s2719_s1 + $0x24] ss:$8 sps:$4 sm:$0xff]   ;;  %v1977_v28 = vld [vmem:[%s2719_s1 + $0x1a0] ss:$8 sps:$4 sm:$0xff]   ;;  %s1684_s19 = sshll.u32 %s2729_s10, 3 }
   0xf   : > { %1091 = vmatpush1.bf16.msra.mxu0 %v1953_v5  ;;  %v2030_v29 = vld [vmem:[%s2719_s1 + $0x20] ss:$8 sps:$4 sm:$0xff]   ;;  %v2034_v30 = vld [vmem:[%s2719_s1 + $0x34] ss:$8 sps:$4 sm:$0xff]   ;;  %v1980_v32 = vld [vmem:[%s2719_s1 + $0x1b0] ss:$8 sps:$4 sm:$0xff]   ;;  %s330_s22 = scalar_lea.vmem %s2727_s9, %s1684_s19 }
  0x10   : > { %1092 = vmatprep.subr.bf16.mxu0 %v1954_v6  ;;  %s2264_s17 = scalar_lea.vmem %s2718_s0, %s1933_s29  ;;  %v1978_v31 = vld [vmem:[%s2719_s1 + $0x1b4] ss:$8 sps:$4 sm:$0xff]   ;;  %v2036_v33 = vld [vmem:[%s2719_s1 + $0x30] ss:$8 sps:$4 sm:$0xff]   ;;  %v2040_v34 = vld [vmem:[%s2719_s1 + $0x44] ss:$8 sps:$4 sm:$0xff]  }
  0x11   : > { %v2273_v13 = vld [vmem:[%s2264_s17 + $0x8] sm:$0xff]  ;;  %1048 = vmatpush1.bf16.msra.mxu1 %v2024_v24  ;;  %v2046_v38 = vld [vmem:[%s2719_s1 + $0x54] ss:$8 sps:$4 sm:$0xff]   ;;  %v1986_v40 = vld [vmem:[%s2719_s1 + $0x1d0] ss:$8 sps:$4 sm:$0xff]  }
  0x12   : > { %v1688_v14 = vcombine.high %v2273_v13, %v2273_v13  ;;  %1049 = vmatprep.subr.bf16.mxu1 %v2028_v27  ;;  %v1981_v35 = vld [vmem:[%s2719_s1 + $0x1c4] ss:$8 sps:$4 sm:$0xff]   ;;  %v1983_v36 = vld [vmem:[%s2719_s1 + $0x1c0] ss:$8 sps:$4 sm:$0xff]   ;;  %v1984_v39 = vld [vmem:[%s2719_s1 + $0x1d4] ss:$8 sps:$4 sm:$0xff]   ;;  %v1687_v54 = vcombine.low %v2273_v13, %v2273_v13 }
  0x13   : > { %1093 = vmatpush1.bf16.msra.mxu0 %v1956_v7  ;;  %v2042_v37 = vld [vmem:[%s2719_s1 + $0x40] ss:$8 sps:$4 sm:$0xff]   ;;  %v2048_v41 = vld [vmem:[%s2719_s1 + $0x50] ss:$8 sps:$4 sm:$0xff]   ;;  %v2052_v42 = vld [vmem:[%s2719_s1 + $0x64] ss:$8 sps:$4 sm:$0xff]  }
  0x14   : > { %1094 = vmatprep.subr.bf16.mxu0 %v1957_v8  ;;  %1118 = vmatprep.mubr.bf16.mxu0 %v1688_v14  ;;  %v1987_v43 = vld [vmem:[%s2719_s1 + $0x1e4] ss:$8 sps:$4 sm:$0xff]   ;;  %v1989_v44 = vld [vmem:[%s2719_s1 + $0x1e0] ss:$8 sps:$4 sm:$0xff]   ;;  %v2058_v46 = vld [vmem:[%s2719_s1 + $0x74] ss:$8 sps:$4 sm:$0xff]  }
  0x15   : > { %1050 = vmatpush1.bf16.msra.mxu1 %v2030_v29  ;;  %v2054_v45 = vld [vmem:[%s2719_s1 + $0x60] ss:$8 sps:$4 sm:$0xff]   ;;  %v1990_v47 = vld [vmem:[%s2719_s1 + $0x1f4] ss:$8 sps:$4 sm:$0xff]   ;;  %v1992_v48 = vld [vmem:[%s2719_s1 + $0x1f0] ss:$8 sps:$4 sm:$0xff]  }
  0x16   : > { %1051 = vmatprep.subr.bf16.mxu1 %v2034_v30  ;;  %v2060_v49 = vld [vmem:[%s2719_s1 + $0x70] ss:$8 sps:$4 sm:$0xff]   ;;  %v2064_v50 = vld [vmem:[%s2719_s1 + $0x84] ss:$8 sps:$4 sm:$0xff]   ;;  %v1995_v52 = vld [vmem:[%s2719_s1 + $0x200] ss:$8 sps:$4 sm:$0xff]  }
  0x17   : > { %1095 = vmatpush1.bf16.msra.mxu0 %v1959_v9  ;;  %v1997_v51 = vld [vmem:[%s2719_s1 + $0x204] ss:$8 sps:$4 sm:$0xff]   ;;  %v2392_v53 = vld [vmem:[%s2264_s17 + $0x10] sm:$0xff]  ;;  %v2066_v55 = vld [vmem:[%s2719_s1 + $0x80] ss:$8 sps:$4 sm:$0xff]  }
  0x18   : > { %1096 = vmatprep.subr.bf16.mxu0 %v1960_v10  ;;  %v2070_v56 = vld [vmem:[%s2719_s1 + $0x94] ss:$8 sps:$4 sm:$0xff]   ;;  %v1690_v58 = vcombine.high %v2392_v53, %v2392_v53  ;;  %v1998_v59 = vld [vmem:[%s2719_s1 + $0x210] ss:$8 sps:$4 sm:$0xff]   ;;  %v2078_v61 = vld [vmem:[%s2719_s1 + $0xa4] ss:$8 sps:$4 sm:$0xff]  }
  0x19   : > { %1052 = vmatpush1.bf16.msra.mxu1 %v2036_v33  ;;  %v2000_v57 = vld [vmem:[%s2719_s1 + $0x214] ss:$8 sps:$4 sm:$0xff]   ;;  %v2072_v60 = vld [vmem:[%s2719_s1 + $0x90] ss:$8 sps:$4 sm:$0xff]   ;;  %v2003_v62 = vld [vmem:[%s2719_s1 + $0x224] ss:$8 sps:$4 sm:$0xff]  }
  0x1a   : > { %1053 = vmatprep.subr.bf16.mxu1 %v2040_v34  ;;  %v2001_v63 = vld [vmem:[%s2719_s1 + $0x220] ss:$8 sps:$4 sm:$0xff]   ;;  %v2084_v1 = vld [vmem:[%s2719_s1 + $0xb4] ss:$8 sps:$4 sm:$0xff]   ;;  %v2086_v3 = vld [vmem:[%s2719_s1 + $0xb0] ss:$8 sps:$4 sm:$0xff]  }
  0x1b   : > { %1097 = vmatpush1.bf16.msra.mxu0 %v1962_v11  ;;  %v2080_v0 = vld [vmem:[%s2719_s1 + $0xa0] ss:$8 sps:$4 sm:$0xff]   ;;  %v2006_v2 = vld [vmem:[%s2719_s1 + $0x234] ss:$8 sps:$4 sm:$0xff]   ;;  %v2004_v5 = vld [vmem:[%s2719_s1 + $0x230] ss:$8 sps:$4 sm:$0xff]  }
  0x1c   : > { %1098 = vmatprep.subr.bf16.mxu0 %v1963_v12  ;;  %v332_v4 = vld [vmem:[%s2264_s17] sm:$0xff]  ;;  %v2096_v11 = vld [vmem:[%s2719_s1 + $0xd4] ss:$8 sps:$4 sm:$0xff]   ;;  %v2010_v13 = vld [vmem:[%s2719_s1 + $0x250] ss:$8 sps:$4 sm:$0xff]  }
  0x1d   : > { %1054 = vmatpush1.bf16.msra.mxu1 %v2042_v37  ;;  %v2090_v6 = vld [vmem:[%s2719_s1 + $0xc4] ss:$8 sps:$4 sm:$0xff]   ;;  %v1686_v7 = vcombine.high %v332_v4, %v332_v4  ;;  %v2007_v9 = vld [vmem:[%s2719_s1 + $0x240] ss:$8 sps:$4 sm:$0xff]   ;;  %v2012_v12 = vld [vmem:[%s2719_s1 + $0x254] ss:$8 sps:$4 sm:$0xff]   ;;  %v1685_v27 = vcombine.low %v332_v4, %v332_v4 }
  0x1e   : > { %1055 = vmatprep.subr.bf16.mxu1 %v2046_v38  ;;  %v2009_v8 = vld [vmem:[%s2719_s1 + $0x244] ss:$8 sps:$4 sm:$0xff]   ;;  %v2092_v10 = vld [vmem:[%s2719_s1 + $0xc0] ss:$8 sps:$4 sm:$0xff]   ;;  %v2098_v14 = vld [vmem:[%s2719_s1 + $0xd0] ss:$8 sps:$4 sm:$0xff]  }
  0x1f   : > { %1099 = vmatpush1.bf16.msra.mxu0 %v1965_v15  ;;  %1077 = vmatprep.mubr.bf16.mxu1 %v1686_v7  ;;  %v2102_v15 = vld [vmem:[%s2719_s1 + $0xe4] ss:$8 sps:$4 sm:$0xff]   ;;  %v2110_v21 = vld [vmem:[%s2719_s1 + $0xf0] ss:$8 sps:$4 sm:$0xff]   ;;  %v2033_v29 = vld [vmem:[%s2719_s1 + $0x294] ss:$8 sps:$4 sm:$0xff]  }
  0x20   : > { %1100 = vmatprep.subr.bf16.mxu0 %v1966_v16  ;;  %v2015_v16 = vld [vmem:[%s2719_s1 + $0x264] ss:$8 sps:$4 sm:$0xff]   ;;  %v2019_v22 = vld [vmem:[%s2719_s1 + $0x270] ss:$8 sps:$4 sm:$0xff]   ;;  %v2045_v37 = vld [vmem:[%s2719_s1 + $0x2b4] ss:$8 sps:$4 sm:$0xff]  }
  0x21   : > { %1056 = vmatpush1.bf16.msra.mxu1 %v2048_v41  ;;  %v2120_v23 = vld [vmem:[%s2721_s3 + $0x40] sm:$0xff]   ;;  %v2123_v30 = vld [vmem:[%s2721_s3 + $0x8] sm:$0xff]   ;;  %v2125_v34 = vld [vmem:[%s2721_s3 + $0x10] sm:$0xff]  }
  0x22   : > { %1057 = vmatprep.subr.bf16.mxu1 %v2052_v42  ;;  %v2027_v24 = vld [vmem:[%s2719_s1 + $0x284] ss:$8 sps:$4 sm:$0xff]   ;;  %v2127_v38 = vld [vmem:[%s2721_s3 + $0x18] sm:$0xff]   ;;  %v2132_v7 = vld [vmem:[%s2721_s3 + $0x70] sm:$0xff]  }
  0x23   : > { %1101 = vmatpush1.bf16.msra.mxu0 %v1968_v17  ;;  %v2013_v17 = vld [vmem:[%s2719_s1 + $0x260] ss:$8 sps:$4 sm:$0xff]   ;;  %v2039_v33 = vld [vmem:[%s2719_s1 + $0x2a4] ss:$8 sps:$4 sm:$0xff]   ;;  %v2119_v4 = vld [vmem:[%s2264_s17 + $0x18] ss:$0 sps:$4 sm:$0xff]  }
  0x24   : > { %1102 = vmatprep.subr.bf16.mxu0 %v1969_v18  ;;  %v2021_v18 = vld [vmem:[%s2719_s1 + $0x274] ss:$8 sps:$4 sm:$0xff]   ;;  %v2051_v41 = vld [vmem:[%s2719_s1 + $0x2c4] ss:$8 sps:$4 sm:$0xff]  }
  0x25   : > { %1058 = vmatpush1.bf16.msra.mxu1 %v2054_v45  ;;  %v2129_v42 = vld [vmem:[%s2721_s3 + $0x20] sm:$0xff]   ;;  %v2055_v45 = vld [vmem:[%s2719_s1 + $0x2d0] ss:$8 sps:$4 sm:$0xff]  }
  0x26   : > { %1059 = vmatprep.subr.bf16.mxu1 %v2058_v46  ;;  %v2063_v46 = vld [vmem:[%s2719_s1 + $0x2e4] ss:$8 sps:$4 sm:$0xff]  }
  0x27   : > { %1103 = vmatpush1.bf16.msra.mxu0 %v1971_v19  ;;  %v2104_v19 = vld [vmem:[%s2719_s1 + $0xe0] ss:$8 sps:$4 sm:$0xff]  }
  0x28   : > { %1104 = vmatprep.subr.bf16.mxu0 %v1972_v20  ;;  %v2108_v20 = vld [vmem:[%s2719_s1 + $0xf4] ss:$8 sps:$4 sm:$0xff]  }
  0x29   : > { %1060 = vmatpush1.bf16.msra.mxu1 %v2060_v49  ;;  %v2067_v49 = vld [vmem:[%s2719_s1 + $0x2f0] ss:$8 sps:$4 sm:$0xff]  }
  0x2a   : > { %1061 = vmatprep.subr.bf16.mxu1 %v2064_v50  ;;  %v2077_v50 = vld [vmem:[%s2719_s1 + $0x304] ss:$8 sps:$4 sm:$0xff]  }
  0x2b   : > { %1105 = vmatpush1.bf16.msra.mxu0 %v1974_v25  ;;  %v2121_v25 = vld [vmem:[%s2721_s3] sm:$0xff]  }
  0x2c   : > { %1106 = vmatprep.subr.bf16.mxu0 %v1975_v26  ;;  %v2025_v26 = vld [vmem:[%s2719_s1 + $0x280] ss:$8 sps:$4 sm:$0xff]  }
  0x2d   : > { %1062 = vmatpush1.bf16.msra.mxu1 %v2066_v55  ;;  %v2081_v55 = vld [vmem:[%s2719_s1 + $0x310] ss:$8 sps:$4 sm:$0xff]  }
  0x2e   : > { %1063 = vmatprep.subr.bf16.mxu1 %v2070_v56  ;;  %v2164_v56 = vmov 0  }
  0x2f   : > { %1107 = vmatpush1.bf16.msra.mxu0 %v1977_v28  ;;  %v2122_v28 = vld [vmem:[%s2721_s3 + $0x48] sm:$0xff]  }
  0x30   : > { %1108 = vmatprep.subr.bf16.mxu0 %v1978_v31  ;;  %v2031_v31 = vld [vmem:[%s2719_s1 + $0x290] ss:$8 sps:$4 sm:$0xff]  }
  0x31   : > { %1064 = vmatpush1.bf16.msra.mxu1 %v2072_v60  ;;  %v2101_v60 = vld [vmem:[%s2719_s1 + $0x344] ss:$8 sps:$4 sm:$0xff]  }
  0x32   : > { %1065 = vmatprep.subr.bf16.mxu1 %v2078_v61  ;;  %v2099_v61 = vld [vmem:[%s2719_s1 + $0x340] ss:$8 sps:$4 sm:$0xff]  }
  0x33   : > { %1109 = vmatpush1.bf16.msra.mxu0 %v1980_v32  ;;  %v2124_v32 = vld [vmem:[%s2721_s3 + $0x50] sm:$0xff]  }
  0x34   : > { %1110 = vmatprep.subr.bf16.mxu0 %v1981_v35  ;;  %v2037_v35 = vld [vmem:[%s2719_s1 + $0x2a0] ss:$8 sps:$4 sm:$0xff]  }
  0x35   : > { %1066 = vmatpush1.bf16.msra.mxu1 %v2080_v0  ;;  %v2113_v0 = vld [vmem:[%s2719_s1 + $0x364] ss:$8 sps:$4 sm:$0xff]  }
  0x36   : > { %1067 = vmatprep.subr.bf16.mxu1 %v2084_v1  ;;  %v2111_v1 = vld [vmem:[%s2719_s1 + $0x360] ss:$8 sps:$4 sm:$0xff]  }
  0x37   : > { %1111 = vmatpush1.bf16.msra.mxu0 %v1983_v36  ;;  %v2126_v36 = vld [vmem:[%s2721_s3 + $0x58] sm:$0xff]  }
  0x38   : > { %1112 = vmatprep.subr.bf16.mxu0 %v1984_v39  ;;  %v2043_v39 = vld [vmem:[%s2719_s1 + $0x2b0] ss:$8 sps:$4 sm:$0xff]  }
  0x39   : > { %1068 = vmatpush1.bf16.msra.mxu1 %v2086_v3  ;;  %v2116_v3 = vld [vmem:[%s2719_s1 + $0x370] ss:$8 sps:$4 sm:$0xff]  }
  0x3a   : > { %1069 = vmatprep.subr.bf16.mxu1 %v2090_v6  ;;  %v2131_v6 = vld [vmem:[%s2721_s3 + $0x28] sm:$0xff]  }
  0x3b   : > { %1113 = vmatpush1.bf16.msra.mxu0 %v1986_v40  ;;  %v2128_v40 = vld [vmem:[%s2721_s3 + $0x60] sm:$0xff]  }
  0x3c   : > { %1114 = vmatprep.subr.bf16.mxu0 %v1987_v43  ;;  %v2049_v43 = vld [vmem:[%s2719_s1 + $0x2c0] ss:$8 sps:$4 sm:$0xff]  }
  0x3d   : > { %1070 = vmatpush1.bf16.msra.mxu1 %v2092_v10  ;;  %v2135_v10 = vld [vmem:[%s2721_s3 + $0x38] sm:$0xff]  }
  0x3e   : > { %1071 = vmatprep.subr.bf16.mxu1 %v2096_v11  ;;  %v2165_v11 = vmov 0.0  }
  0x3f   : > { %1115 = vmatpush1.bf16.msra.mxu0 %v1989_v44  ;;  %v2057_v44 = vld [vmem:[%s2719_s1 + $0x2d4] ss:$8 sps:$4 sm:$0xff]  }
  0x40   : > { %1116 = vmatprep.subr.bf16.mxu0 %v1990_v47  ;;  %v2061_v47 = vld [vmem:[%s2719_s1 + $0x2e0] ss:$8 sps:$4 sm:$0xff]  }
  0x41   : > { %1072 = vmatpush1.bf16.msra.mxu1 %v2098_v14 }
  0x42   : > { %1073 = vmatprep.subr.bf16.mxu1 %v2102_v15 }
  0x43   : > { %1117 = vmatpush1.bf16.msra.mxu0 %v1992_v48  ;;  %v2069_v48 = vld [vmem:[%s2719_s1 + $0x2f4] ss:$8 sps:$4 sm:$0xff]  }
  0x44   : > { %1127 = vmatprep.subr.bf16.mxu0 %v1997_v51  ;;  %v1689_v51 = vcombine.low %v2392_v53, %v2392_v53  ;;  %v2089_v53 = vld [vmem:[%s2719_s1 + $0x324] ss:$8 sps:$4 sm:$0xff]  }
  0x45   : > { %1074 = vmatpush1.bf16.msra.mxu1 %v2104_v19  ;;  %v448_v19 = vld [vmem:[%s2720_s2] sm:$0x3] }
  0x46   : > { %1119 = vmatmul.mubr.bf16.vlgmr.msra.gmra.mrb[0].mxu0 %v1687_v54  ;;  %1075 = vmatprep.subr.bf16.mxu1 %v2108_v20  ;;  %v2083_v54 = vld [vmem:[%s2719_s1 + $0x314] ss:$8 sps:$4 sm:$0xff]  }
  0x47   : > { %1128 = vmatpush1.bf16.msra.mxu0 %v1995_v52  ;;  %1159 = vmatprep.mubr.bf16.mxu0 %v1690_v58  ;;  %v2075_v52 = vld [vmem:[%s2719_s1 + $0x300] ss:$8 sps:$4 sm:$0xff]   ;;  %v2095_v58 = vld [vmem:[%s2719_s1 + $0x334] ss:$8 sps:$4 sm:$0xff]  }
  0x48   : > { %1129 = vmatprep.subr.bf16.mxu0 %v2000_v57  ;;  %v2087_v57 = vld [vmem:[%s2719_s1 + $0x320] ss:$8 sps:$4 sm:$0xff]  }
  0x49   : > { %1076 = vmatpush1.bf16.msra.mxu1 %v2110_v21 }
  0x4a   : > { %1841 = vmatprep.subr.bf16.mxu1 %v2120_v23 }
  0x4b   : > { %1130 = vmatpush1.bf16.msra.mxu0 %v1998_v59  ;;  %v2093_v59 = vld [vmem:[%s2719_s1 + $0x330] ss:$8 sps:$4 sm:$0xff]  }
  0x4c   : > { %1131 = vmatprep.subr.bf16.mxu0 %v2003_v62  ;;  %1078 = vmatmul.mubr.bf16.vlgmr.msra.gmra.mrb[0].mxu1 %v1685_v27  ;;  %v2107_v62 = vld [vmem:[%s2719_s1 + $0x354] ss:$8 sps:$4 sm:$0xff]  }
  0x4d   : > { %1842 = vmatpush3.bf16.msra.mxu1 %v2121_v25 }
  0x4e   : > { %1843 = vmatprep.subr.bf16.mxu1 %v2122_v28 }
  0x4f   : > { %1132 = vmatpush1.bf16.msra.mxu0 %v2001_v63  ;;  %v2105_v63 = vld [vmem:[%s2719_s1 + $0x350] ss:$8 sps:$4 sm:$0xff]  }
  0x50   : > { %1133 = vmatprep.subr.bf16.mxu0 %v2006_v2  ;;  %v2118_v2 = vld [vmem:[%s2719_s1 + $0x374] ss:$8 sps:$4 sm:$0xff]  }
  0x51   : > { %1844 = vmatpush3.bf16.msra.mxu1 %v2123_v30 }
  0x52   : > { %1845 = vmatprep.subr.bf16.mxu1 %v2124_v32 }
  0x53   : > { %1134 = vmatpush1.bf16.msra.mxu0 %v2004_v5  ;;  %v2130_v5 = vld [vmem:[%s2721_s3 + $0x68] sm:$0xff]  }
  0x54   : > { %1135 = vmatprep.subr.bf16.mxu0 %v2009_v8  ;;  %v2133_v8 = vld [vmem:[%s2721_s3 + $0x30] sm:$0xff]  }
  0x55   : > { %1846 = vmatpush3.bf16.msra.mxu1 %v2125_v34  ;;  %v2136_v34 = vld [vmem:[%s2723_s5] sm:$0xff]  }
  0x56   : > { %1847 = vmatprep.subr.bf16.mxu1 %v2126_v36  ;;  %v2137_v36 = vld [vmem:[%s2723_s5 + $0x8] sm:$0xff]  }
  0x57   : > { %1136 = vmatpush1.bf16.msra.mxu0 %v2007_v9  ;;  %v2134_v9 = vld [vmem:[%s2721_s3 + $0x78] sm:$0xff]  }
  0x58   : > { %1137 = vmatprep.subr.bf16.mxu0 %v2012_v12 }
  0x59   : > { %1848 = vmatpush3.bf16.msra.mxu1 %v2127_v38  ;;  %v2139_v38 = vld [vmem:[%s2723_s5 + $0x18] sm:$0xff]  }
  0x5a   : > { %1849 = vmatprep.subr.bf16.mxu1 %v2128_v40  ;;  %v2141_v40 = vld [vmem:[%s2723_s5 + $0x28] sm:$0xff]  }
  0x5b   : > { %1138 = vmatpush1.bf16.msra.mxu0 %v2010_v13 }
  0x5c   : > { %1139 = vmatprep.subr.bf16.mxu0 %v2015_v16  ;;  %v450_v16 = vlaneseq }
  0x5d   : > { %1850 = vmatpush3.bf16.msra.mxu1 %v2129_v42  ;;  %v2143_v42 = vld [vmem:[%s2723_s5 + $0x38] sm:$0xff]  }
  0x5e   : > { %1851 = vmatprep.subr.bf16.mxu1 %v2130_v5 }
  0x5f   : > { %1140 = vmatpush1.bf16.msra.mxu0 %v2013_v17  ;;  %v451_v17 = vshrl.u32 %v450_v16, 7 }
  0x60   : > { %1141 = vmatprep.subr.bf16.mxu0 %v2021_v18 }
  0x61   : > { %1852 = vmatpush3.bf16.msra.mxu1 %v2131_v6  ;;  %v452_v18 = vsub.s32 0, %v451_v17  ;;  %v456_v20 = vsub.s32 1, %v451_v17 }
  0x62   : > { %1853 = vmatprep.subr.bf16.mxu1 %v2132_v7 }
  0x63   : > { %1142 = vmatpush1.bf16.msra.mxu0 %v2019_v22  ;;  %v453_v21 = vrot.slane %v448_v19, %v452_v18  ;;  %v457_v22 = vrot.slane %v448_v19, %v456_v20 }
  0x64   : > { %1143 = vmatprep.subr.bf16.mxu0 %v2027_v24 }
  0x65   : > { %1854 = vmatpush3.bf16.msra.mxu1 %v2133_v8 }
  0x66   : > { %1855 = vmatprep.subr.bf16.mxu1 %v2134_v9 }
  0x67   : > { %1144 = vmatpush1.bf16.msra.mxu0 %v2025_v26 }
  0x68   : > { %1145 = vmatprep.subr.bf16.mxu0 %v2033_v29 }
  0x69   : > { %1856 = vmatpush3.bf16.msra.mxu1 %v2135_v10 }
  0x6a   : > { %1881 = vmatprep.subr.bf16.mxu1 %v2165_v11 }
  0x6b   : > { %1146 = vmatpush1.bf16.msra.mxu0 %v2031_v31 }
  0x6c   : > { %1147 = vmatprep.subr.bf16.mxu0 %v2039_v33 }
  0x6f   : > { %1148 = vmatpush1.bf16.msra.mxu0 %v2037_v35 }
  0x70   : > { %1149 = vmatprep.subr.bf16.mxu0 %v2045_v37  ;;  %v2138_v37 = vld [vmem:[%s2723_s5 + $0x10] sm:$0xff]  }
  0x73   : > { %1150 = vmatpush1.bf16.msra.mxu0 %v2043_v39  ;;  %v2140_v39 = vld [vmem:[%s2723_s5 + $0x20] sm:$0xff]  }
  0x74   : > { %1151 = vmatprep.subr.bf16.mxu0 %v2051_v41  ;;  %v2142_v41 = vld [vmem:[%s2723_s5 + $0x30] sm:$0xff]  }
  0x77   : > { %1152 = vmatpush1.bf16.msra.mxu0 %v2049_v43 }
  0x78   : > { %1153 = vmatprep.subr.bf16.mxu0 %v2057_v44  ;;  %v1804_v44 = vld [vmem:[%s2722_s4] ss:$0 sm:$0xff] }
  0x7b   : > { %1154 = vmatpush1.bf16.msra.mxu0 %v2055_v45 }
  0x7c   : > { %1155 = vmatprep.subr.bf16.mxu0 %v2063_v46 }
  0x7f   : > { %1156 = vmatpush1.bf16.msra.mxu0 %v2061_v47 }
  0x80   : > { %1157 = vmatprep.subr.bf16.mxu0 %v2069_v48 }
  0x83   : > { %1158 = vmatpush1.bf16.msra.mxu0 %v2067_v49 }
  0x84   : > { %1168 = vmatprep.subr.bf16.mxu0 %v2077_v50 }
  0x86   : > { %1160 = vmatmul.mubr.bf16.vlgmr.msra.gmra.mrb[0].mxu0 %v1689_v51  ;;  %v2144_v51 = vld [vmem:[%s2725_s7] sm:$0xff]  }
  0x87   : > { %1169 = vmatpush1.bf16.msra.mxu0 %v2075_v52  ;;  %1200 = vmatprep.mubr.bf16.mxu0 %v2164_v56  ;;  %v2147_v56 = vld [vmem:[%s2725_s7 + $0x18] sm:$0xff]  }
  0x88   : > { %1170 = vmatprep.subr.bf16.mxu0 %v2083_v54  ;;  %v2145_v54 = vld [vmem:[%s2725_s7 + $0x8] sm:$0xff]  }
  0x8b   : > { %1171 = vmatpush1.bf16.msra.mxu0 %v2081_v55  ;;  %v2146_v55 = vld [vmem:[%s2725_s7 + $0x10] sm:$0xff]  }
  0x8c   : > { %1172 = vmatprep.subr.bf16.mxu0 %v2089_v53  ;;  %v2148_v53 = vld [vmem:[%s2725_s7 + $0x20] sm:$0xff]  }
  0x8f   : > { %1173 = vmatpush1.bf16.msra.mxu0 %v2087_v57  ;;  %v2149_v57 = vld [vmem:[%s2725_s7 + $0x28] sm:$0xff]  }
  0x90   : > { %1174 = vmatprep.subr.bf16.mxu0 %v2095_v58  ;;  %v2150_v58 = vld [vmem:[%s2725_s7 + $0x30] sm:$0xff]  }
  0x93   : > { %1175 = vmatpush1.bf16.msra.mxu0 %v2093_v59  ;;  %v2151_v59 = vld [vmem:[%s2725_s7 + $0x38] sm:$0xff]  }
  0x94   : > { %1176 = vmatprep.subr.bf16.mxu0 %v2101_v60  ;;  %v1821_v60 = vld [vmem:[%s2724_s6] ss:$0 sm:$0xff] }
  0x97   : > { %1177 = vmatpush1.bf16.msra.mxu0 %v2099_v61 }
  0x98   : > { %1178 = vmatprep.subr.bf16.mxu0 %v2107_v62 }
  0x9b   : > { %1179 = vmatpush1.bf16.msra.mxu0 %v2105_v63 }
  0x9c   : > { %1180 = vmatprep.subr.bf16.mxu0 %v2113_v0 }
  0x9f   : > { %1181 = vmatpush1.bf16.msra.mxu0 %v2111_v1 }
  0xa0   : > { %1182 = vmatprep.subr.bf16.mxu0 %v2118_v2 }
  0xa3   : > { %1183 = vmatpush1.bf16.msra.mxu0 %v2116_v3 }
  0xa6   : > { %1201 = vmatmul.mubr.bf16.vlgmr.msra.gmra.mrb[0].mxu0 %v2119_v4  ;;  %v1830_v4 = vld [vmem:[%s2726_s8] ss:$0 sm:$0xff] }
 0x11f   : > { %v1079_v12 = vpop.f32.mrb[0].mxu1 }
 0x120   : > { %v1081_v13 = vpop.f32.mrb[1].mxu1  ;;  %v1080_v23 = vadd.f32 %v1079_v12, %v453_v21 }
 0x121   : > { %v1083_v14 = vpop.f32.mrb[2].mxu1  ;;  %v1082_v24 = vadd.f32 %v1081_v13, %v457_v22 }
 0x122   : > { %v1084_v15 = vpop.f32.mrb[3].mxu1 }
 0x179   : > { %v1202_v25 = vpop.f32.mrb[0].mxu0 }
 0x17a   : > { %v1922_v26 = vadd.f32 %v1202_v25, %v1080_v23  ;;  %v1204_v27 = vpop.f32.mrb[1].mxu0 }
 0x17b   : > { %v1924_v28 = vadd.f32 %v1204_v27, %v1082_v24  ;;  %v1206_v29 = vpop.f32.mrb[2].mxu0 }
 0x17c   : > { %v1209_v30 = vmax.f32 %v1922_v26, 0.0  ;;  %v1207_v31 = vpop.f32.mrb[3].mxu0 }
 0x17d   : > { %v1210_v32 = vmax.f32 %v1924_v28, 0.0 }
 0x17e   : > { %v1211_v35 = vpack.c.bf16 %v1209_v30, %v1209_v30 }
 0x17f   : > { %v1212_v33 = vpack.c.bf16 %v1210_v32, %v1210_v32 }
 0x181   : > { %1380 = vmatprep.mubr.bf16.mxu1 %v1212_v33 }
 0x182   : > { %1381 = vmatmul.mubr.bf16.vlgmr.msra.gmra.mrb[4].mxu1 %v1211_v35 }
 0x183   : > { %1882 = vmatpush3.bf16.msra.mxu1 %v2136_v34  ;;  %1897 = vmatprep.mubr.msk.bf16.mxu1 %vm2166_vm0, %v2165_v11 }
 0x184   : > { %1883 = vmatprep.subr.bf16.mxu1 %v2165_v11 }
 0x187   : > { %1884 = vmatpush3.bf16.msra.mxu1 %v2137_v36 }
 0x188   : > { %1885 = vmatprep.subr.bf16.mxu1 %v2165_v11 }
 0x18b   : > { %1886 = vmatpush3.bf16.msra.mxu1 %v2138_v37 }
 0x18c   : > { %1887 = vmatprep.subr.bf16.mxu1 %v2165_v11 }
 0x18f   : > { %1888 = vmatpush3.bf16.msra.mxu1 %v2139_v38 }
 0x190   : > { %1889 = vmatprep.subr.bf16.mxu1 %v2165_v11 }
 0x193   : > { %1890 = vmatpush3.bf16.msra.mxu1 %v2140_v39 }
 0x194   : > { %1891 = vmatprep.subr.bf16.mxu1 %v2165_v11 }
 0x197   : > { %1892 = vmatpush3.bf16.msra.mxu1 %v2141_v40 }
 0x198   : > { %1893 = vmatprep.subr.bf16.mxu1 %v2165_v11 }
 0x19b   : > { %1894 = vmatpush3.bf16.msra.mxu1 %v2142_v41 }
 0x19c   : > { %1895 = vmatprep.subr.bf16.mxu1 %v2165_v11 }
 0x19f   : > { %1896 = vmatpush3.bf16.msra.mxu1 %v2143_v42 }
 0x1a0   : > { %1901 = vmatprep.subr.bf16.mxu1 %v2165_v11 }
 0x255   : > { %v1857_v43 = vpop.f32.mrb[4].mxu1 }
 0x256   : > { %v1858_v45 = vpop.f32.mrb[5].mxu1 }
 0x257   : > { %v1859_v46 = vadd.f32 %v1858_v45, %v1857_v43  ;;  %v1860_v47 = vpop.f32.mrb[6].mxu1 }
 0x258   : > { %v1861_v48 = vpop.f32.mrb[7].mxu1 }
 0x259   : > { %v1383_v49 = vadd.f32 %v1859_v46, %v1804_v44 }
 0x25b   : > { %v1388_v50 = vmax.f32 %v1383_v49, 0.0 }
 0x25d   : > { %v1389_v52 = vpack.c.bf16 %v1388_v50, %v1388_v50 }
 0x25f   : > { %1898 = vmatmul.mubr.bf16.vlgmr.msra.gmra.mrb[8].mxu1 %v1389_v52 }
 0x260   : > { %1902 = vmatpush3.bf16.msra.mxu1 %v2144_v51  ;;  %1917 = vmatprep.mubr.msk.bf16.mxu1 %vm2166_vm0, %v2165_v11 }
 0x261   : > { %1903 = vmatprep.subr.bf16.mxu1 %v2165_v11 }
 0x264   : > { %1904 = vmatpush3.bf16.msra.mxu1 %v2145_v54 }
 0x265   : > { %1905 = vmatprep.subr.bf16.mxu1 %v2165_v11 }
 0x268   : > { %1906 = vmatpush3.bf16.msra.mxu1 %v2146_v55 }
 0x269   : > { %1907 = vmatprep.subr.bf16.mxu1 %v2165_v11 }
 0x26c   : > { %1908 = vmatpush3.bf16.msra.mxu1 %v2147_v56 }
 0x26d   : > { %1909 = vmatprep.subr.bf16.mxu1 %v2165_v11 }
 0x270   : > { %1910 = vmatpush3.bf16.msra.mxu1 %v2148_v53 }
 0x271   : > { %1911 = vmatprep.subr.bf16.mxu1 %v2165_v11 }
 0x274   : > { %1912 = vmatpush3.bf16.msra.mxu1 %v2149_v57 }
 0x275   : > { %1913 = vmatprep.subr.bf16.mxu1 %v2165_v11 }
 0x278   : > { %1914 = vmatpush3.bf16.msra.mxu1 %v2150_v58 }
 0x279   : > { %1915 = vmatprep.subr.bf16.mxu1 %v2165_v11 }
 0x27c   : > { %1916 = vmatpush3.bf16.msra.mxu1 %v2151_v59 }
 0x332   : > { %v1495_v61 = vpop.f32.mrb[8].mxu1 }
 0x333   : > { %v1496_v62 = vadd.f32 %v1821_v60, %v1495_v61  ;;  %v1899_v63 = vpop.f32.mrb[9].mxu1 }
 0x334   : > { %v1498_v0 = vpop.f32.mrb[10].mxu1 }
 0x335   : > { %v1501_v1 = vmax.f32 %v1496_v62, 0.0  ;;  %v1900_v2 = vpop.f32.mrb[11].mxu1 }
 0x337   : > { %v1502_v3 = vpack.c.bf16 %v1501_v1, %v1501_v1 }
 0x339   : > { %1918 = vmatmul.mubr.bf16.vlgmr.msra.gmra.mrb[12].mxu1 %v1502_v3 }
 0x40c   : > { %v1608_v5 = vpop.f32.mrb[12].mxu1 }
 0x40d   : > { %v1609_v6 = vadd.f32 %v1830_v4, %v1608_v5  ;;  %v1919_v7 = vpop.f32.mrb[13].mxu1 }
 0x40e   : > { %v1611_v8 = vpop.f32.mrb[14].mxu1 }
 0x40f   : > { %1614 = vmax.xlane.f32.xlu0 %v1609_v6  ;;  %v1920_v9 = vpop.f32.mrb[15].mxu1 }
 0x49c   : > { %v1615_v10 = vpop.xlane.xlu0 %1614 }
 0x49d   : > { %v1616_v11 = vsub.f32 %v1609_v6, %v1615_v10 }
 0x49f   : > { %v1617_v12 = vmul.f32 1.442695, %v1616_v11 }
 0x4a1   : > { %2152 = vpow2.f32 %v1617_v12 }
 0x4ab   : > { %v2153_v13 = vpop.eup %2152 }
 0x4ac   : > { %1619 = vadd.xlane.f32.xlu0 %v2153_v13 }
 0x539   : > { %v1620_v14 = vpop.xlane.xlu0 %1619 }
 0x53a   : > { %2154 = vlog2.f32 %v1620_v14 }
 0x544   : > { %v2155_v15 = vpop.eup %2154 }
 0x545   : > { %v1622_v16 = vmul.f32 0.6931472, %v2155_v15 }
 0x547   : > { %v1623_v17 = vsub.f32 %v1616_v11, %v1622_v16 }
 0x549   : > { %1624 = vst [vmem:[%s330_s22] sm:$0xff] %v1623_v17 }
 0x54a PF: > { %s19_s30 = sadd.s32 1, %s2162_s30  }
 0x54b   : > { %p16_p4 = scmp.ge.s32.totalorder %s19_s30, 5  }
 0x54d   :  { %18 = sbr.rel (!%p16_p4) target bundleno = 1 (0x1), region = 86 }

</bundles_post_ra>
